<compile_context>
chip_gen: v7x
topology: tpu7x:2x2x1
jax: 0.10.0
libtpu: 0.0.40
codegen_flags: <defaults>
</compile_context>

<pallas_src>
import functools

import jax
import jax.numpy as jnp
from jax.experimental import pallas as pl
from jax.experimental.pallas import tpu as pltpu


def _bf16_eup_available():
    """bf16 tanh only pays off where VPU/EUP are bf16-capable (v6e, v7x)."""
    try:
        kind = jax.devices()[0].device_kind.lower()
    except Exception:
        return False
    if any(t in kind for t in ("v2", "v3", "v4", "v5")):
        return False
    return any(t in kind for t in ("v6", "v7", "7x", "trillium"))


def _batch_tiling(batch, cap):
    """Pick (rows_per_tile, n_steps).

    - Small B: one step, block == full array (always layout-legal, no padding).
    - Large B: >= 2 steps (so dimension_semantics=("parallel",) can split the
      batch across the two TensorCores on v7x), tiles are multiples of 8
      sublanes and tied to B so tail padding is < one tile. The ragged final
      block is handled by Pallas boundary padding (inputs padded, OOB output
      rows dropped); each batch row only depends on itself, so padding rows
      cannot contaminate valid rows.
    """
    cap = max(8, int(cap))
    if batch <= min(cap, 1024):
        return batch, 1
    n_steps = max(2, pl.cdiv(batch, cap))
    tb = pl.cdiv(pl.cdiv(batch, n_steps), 8) * 8
    return tb, pl.cdiv(batch, tb)


def mlp_kernel(x_ref, w1_ref, b1_ref, w2_ref, b2_ref, w3r_ref, b3_ref, o_ref,
               *, act_dtype):
    # x_ref: (tb, F) -- batch rows on the sublane axis, features on lanes.
    x = x_ref[...]

    # layer 1: (tb, F) @ (F, 50) + (1, 50) -> tanh          (MXU + EUP)
    z1 = jnp.dot(x, w1_ref[...], preferred_element_type=jnp.float32) + b1_ref[...]
    h1 = jnp.tanh(z1.astype(act_dtype)).astype(jnp.float32)   # bf16 tanh on v6e/v7x

    # layer 2: (tb, 50) @ (50, 50) + (1, 50) -> tanh        (MXU + EUP)
    z2 = jnp.dot(h1, w2_ref[...], preferred_element_type=jnp.float32) + b2_ref[...]
    h2 = jnp.tanh(z2.astype(act_dtype)).astype(jnp.float32)

    # 50 -> 1 epilogue: VPU broadcast-multiply + XLU lane reduce (skip the
    # degenerate N=1 MXU matmul).  z3: (tb, 1) in f32.
    z3 = jnp.sum(h2 * w3r_ref[...], axis=1, keepdims=True) + b3_ref[...]

    # sigmoid(z) == 0.5*(tanh(0.5*z)+1): keeps the epilogue on the EUP, no divide.
    o_ref[...] = (0.5 * (jnp.tanh(0.5 * z3) + 1.0)).astype(o_ref.dtype)


def mlp_forward(x, params, block_b=8192, use_bf16_tanh=None):
    """x: (B, F) float32, params as produced by init_params. Returns (B, 1)."""
    w1, b1, w2, b2, w3, b3 = params
    B, F = x.shape
    H = w1.shape[1]

    if use_bf16_tanh is None:
        use_bf16_tanh = _bf16_eup_available()
    act_dtype = jnp.bfloat16 if use_bf16_tanh else jnp.float32

    tb, n_steps = _batch_tiling(B, block_b)

    # Tiny (~13 KB) weights stay resident in VMEM via constant index maps.
    w3_row = w3.reshape(1, H)           # (1, H) so the epilogue is a lane reduce
    b3_c = b3.reshape(1, 1)

    const = lambda i: (0, 0)
    kernel = functools.partial(mlp_kernel, act_dtype=act_dtype)

    out = pl.pallas_call(
        kernel,
        out_shape=jax.ShapeDtypeStruct((B, 1), jnp.float32),
        grid=(n_steps,),
        in_specs=[
            pl.BlockSpec((tb, F), lambda i: (i, 0)),   # x tile, pipelined over batch
            pl.BlockSpec((F, H), const),               # weights / biases resident
            pl.BlockSpec((1, H), const),
            pl.BlockSpec((H, H), const),
            pl.BlockSpec((1, H), const),
            pl.BlockSpec((1, H), const),
            pl.BlockSpec((1, 1), const),
        ],
        out_specs=pl.BlockSpec((tb, 1), lambda i: (i, 0)),
        compiler_params=pltpu.CompilerParams(
            dimension_semantics=("parallel",),          # megacore split on v7x
            vmem_limit_bytes=48 * 1024 * 1024,          # big tiles ok even on v5e's
        ),                                              # 16 MiB default scoped limit
    )(x, w1, b1, w2, b2, w3_row, b3_c)

    return out                                          # (B, 1) -- no post-slice


def init_params(key, input_size=12, hidden=50, out=1):
    """Deterministic init mimicking PyTorch nn.Linear default (uniform +/- 1/sqrt(fan_in))."""
    ks = jax.random.split(key, 6)

    def uniform(k, shape, fan_in):
        bound = 1.0 / jnp.sqrt(jnp.float32(fan_in))
        return jax.random.uniform(k, shape, jnp.float32, -bound, bound)

    w1 = uniform(ks[0], (input_size, hidden), input_size)
    b1 = uniform(ks[1], (1, hidden), input_size)
    w2 = uniform(ks[2], (hidden, hidden), hidden)
    b2 = uniform(ks[3], (1, hidden), hidden)
    w3 = uniform(ks[4], (hidden, out), hidden)
    b3 = uniform(ks[5], (1, out), hidden)
    return (w1, b1, w2, b2, w3, b3)


def mlp_reference(x, params):
    w1, b1, w2, b2, w3, b3 = params
    h = jnp.tanh(x @ w1 + b1)
    h = jnp.tanh(h @ w2 + b2)
    return jax.nn.sigmoid(h @ w3 + b3)


if __name__ == "__main__":
    key = jax.random.PRNGKey(0)
    k_x, k_x2, k_p = jax.random.split(key, 3)

    F = 12
    params = init_params(k_p, input_size=F)

    use_bf16 = _bf16_eup_available()
    atol = 2e-2 if use_bf16 else 1e-5
    rtol = 1e-2 if use_bf16 else 1e-5

    # Small test: single grid step, block == full array.
    x_small = jax.random.normal(k_x, (8, F), jnp.float32)
    out_small = jax.block_until_ready(mlp_forward(x_small, params))
    ref_small = mlp_reference(x_small, params)
    assert out_small.shape == (8, 1)
    assert jnp.allclose(out_small, ref_small, atol=atol, rtol=rtol)

    # Larger, non-multiple-of-tile batch: exercises grid > 1, ragged final
    # block (Pallas boundary padding), and the pipelined x tiles.
    x_big = jax.random.normal(k_x2, (300, F), jnp.float32)
    out_big = jax.block_until_ready(mlp_forward(x_big, params, block_b=128))
    ref_big = mlp_reference(x_big, params)
    assert out_big.shape == (300, 1)
    assert jnp.allclose(out_big, ref_big, atol=atol, rtol=rtol)

    print("KERNEL_OK")
</pallas_src>

<mosaic_0001>
module attributes {stable_mosaic.version = 11 : i64} {
  func.func @mlp_kernel(%arg0: i32, %arg1: memref<8x12xf32, #tpu.memory_space<vmem>>, %arg2: memref<12x50xf32, #tpu.memory_space<vmem>>, %arg3: memref<1x50xf32, #tpu.memory_space<vmem>>, %arg4: memref<50x50xf32, #tpu.memory_space<vmem>>, %arg5: memref<1x50xf32, #tpu.memory_space<vmem>>, %arg6: memref<1x50xf32, #tpu.memory_space<vmem>>, %arg7: memref<1x1xf32, #tpu.memory_space<vmem>>, %arg8: memref<8x1xf32, #tpu.memory_space<vmem>>) attributes {dimension_semantics = [#tpu.dimension_semantics<parallel>], iteration_bounds = array<i64: 1>, scalar_prefetch = 0 : i64, scratch_operands = 0 : i64, tpu.core_type = #tpu.core_type<tc>, window_params = [{transform_indices = @transform_0, window_bounds = array<i64: 8, 12>}, {pipeline_mode = #tpu.pipeline_mode<synchronous>, transform_indices = @transform_1, window_bounds = array<i64: 12, 50>}, {pipeline_mode = #tpu.pipeline_mode<synchronous>, transform_indices = @transform_2, window_bounds = array<i64: 1, 50>}, {pipeline_mode = #tpu.pipeline_mode<synchronous>, transform_indices = @transform_3, window_bounds = array<i64: 50, 50>}, {pipeline_mode = #tpu.pipeline_mode<synchronous>, transform_indices = @transform_4, window_bounds = array<i64: 1, 50>}, {pipeline_mode = #tpu.pipeline_mode<synchronous>, transform_indices = @transform_5, window_bounds = array<i64: 1, 50>}, {pipeline_mode = #tpu.pipeline_mode<synchronous>, transform_indices = @transform_6, window_bounds = array<i64: 1, 1>}, {transform_indices = @transform_7, window_bounds = array<i64: 8, 1>}]} {
    %c0 = arith.constant 0 : index
    %c0_0 = arith.constant 0 : index
    %0 = vector.load %arg1[%c0, %c0_0] : memref<8x12xf32, #tpu.memory_space<vmem>>, vector<8x12xf32>
    %c0_1 = arith.constant 0 : index
    %c0_2 = arith.constant 0 : index
    %1 = vector.load %arg2[%c0_1, %c0_2] : memref<12x50xf32, #tpu.memory_space<vmem>>, vector<12x50xf32>
    %cst = arith.constant dense<0.000000e+00> : vector<8x50xf32>
    %2 = tpu.matmul %0, %1, %cst {dimension_numbers = #tpu.dot_dimension_numbers<[1], [0], [0], [1], [0, 0, 1, 1], [], []>} : vector<8x12xf32>, vector<12x50xf32>, vector<8x50xf32> -> vector<8x50xf32>
    %c0_3 = arith.constant 0 : index
    %c0_4 = arith.constant 0 : index
    %3 = vector.load %arg3[%c0_3, %c0_4] : memref<1x50xf32, #tpu.memory_space<vmem>>, vector<1x50xf32>
    %4 = vector.broadcast %3 : vector<1x50xf32> to vector<8x50xf32>
    %5 = arith.addf %2, %4 : vector<8x50xf32>
    %6 = math.tanh %5 : vector<8x50xf32>
    %c0_5 = arith.constant 0 : index
    %c0_6 = arith.constant 0 : index
    %7 = vector.load %arg4[%c0_5, %c0_6] : memref<50x50xf32, #tpu.memory_space<vmem>>, vector<50x50xf32>
    %cst_7 = arith.constant dense<0.000000e+00> : vector<8x50xf32>
    %8 = tpu.matmul %6, %7, %cst_7 {dimension_numbers = #tpu.dot_dimension_numbers<[1], [0], [0], [1], [0, 0, 1, 1], [], []>} : vector<8x50xf32>, vector<50x50xf32>, vector<8x50xf32> -> vector<8x50xf32>
    %c0_8 = arith.constant 0 : index
    %c0_9 = arith.constant 0 : index
    %9 = vector.load %arg5[%c0_8, %c0_9] : memref<1x50xf32, #tpu.memory_space<vmem>>, vector<1x50xf32>
    %10 = vector.broadcast %9 : vector<1x50xf32> to vector<8x50xf32>
    %11 = arith.addf %8, %10 : vector<8x50xf32>
    %12 = math.tanh %11 : vector<8x50xf32>
    %c0_10 = arith.constant 0 : index
    %c0_11 = arith.constant 0 : index
    %13 = vector.load %arg6[%c0_10, %c0_11] : memref<1x50xf32, #tpu.memory_space<vmem>>, vector<1x50xf32>
    %14 = vector.broadcast %13 : vector<1x50xf32> to vector<8x50xf32>
    %15 = arith.mulf %12, %14 : vector<8x50xf32>
    %cst_12 = arith.constant dense<0.000000e+00> : vector<8xf32>
    %16 = vector.multi_reduction <add>, %15, %cst_12 [1] : vector<8x50xf32> to vector<8xf32>
    %17 = vector.shape_cast %16 : vector<8xf32> to vector<8x1xf32>
    %c0_13 = arith.constant 0 : index
    %c0_14 = arith.constant 0 : index
    %18 = vector.load %arg7[%c0_13, %c0_14] : memref<1x1xf32, #tpu.memory_space<vmem>>, vector<1x1xf32>
    %19 = vector.broadcast %18 : vector<1x1xf32> to vector<8x1xf32>
    %20 = arith.addf %17, %19 : vector<8x1xf32>
    %cst_15 = arith.constant 5.000000e-01 : f32
    %21 = vector.broadcast %cst_15 : f32 to vector<8x1xf32>
    %22 = arith.mulf %21, %20 : vector<8x1xf32>
    %23 = math.tanh %22 : vector<8x1xf32>
    %cst_16 = arith.constant 1.000000e+00 : f32
    %24 = vector.broadcast %cst_16 : f32 to vector<8x1xf32>
    %25 = arith.addf %23, %24 : vector<8x1xf32>
    %cst_17 = arith.constant 5.000000e-01 : f32
    %26 = vector.broadcast %cst_17 : f32 to vector<8x1xf32>
    %27 = arith.mulf %26, %25 : vector<8x1xf32>
    %c0_18 = arith.constant 0 : index
    %c0_19 = arith.constant 0 : index
    %28 = vector.load %arg8[%c0_18, %c0_19] : memref<8x1xf32, #tpu.memory_space<vmem>>, vector<8x1xf32>
    tpu.vector_store %arg8[%c0_18, %c0_19], %27 {strides = array<i32>} : memref<8x1xf32, #tpu.memory_space<vmem>>, vector<8x1xf32>,
    return
  }
  func.func @transform_0(%arg0: i32) -> (i32, i32) {
    %c0_i32 = arith.constant 0 : i32
    %c0_i32_0 = arith.constant 0 : i32
    return %arg0, %c0_i32 : i32, i32
  }
  func.func @transform_1(%arg0: i32) -> (i32, i32) {
    %c0_i32 = arith.constant 0 : i32
    %c0_i32_0 = arith.constant 0 : i32
    %c0_i32_1 = arith.constant 0 : i32
    return %c0_i32, %c0_i32_0 : i32, i32
  }
  func.func @transform_2(%arg0: i32) -> (i32, i32) {
    %c0_i32 = arith.constant 0 : i32
    %c0_i32_0 = arith.constant 0 : i32
    %c0_i32_1 = arith.constant 0 : i32
    return %c0_i32, %c0_i32_0 : i32, i32
  }
  func.func @transform_3(%arg0: i32) -> (i32, i32) {
    %c0_i32 = arith.constant 0 : i32
    %c0_i32_0 = arith.constant 0 : i32
    %c0_i32_1 = arith.constant 0 : i32
    return %c0_i32, %c0_i32_0 : i32, i32
  }
  func.func @transform_4(%arg0: i32) -> (i32, i32) {
    %c0_i32 = arith.constant 0 : i32
    %c0_i32_0 = arith.constant 0 : i32
    %c0_i32_1 = arith.constant 0 : i32
    return %c0_i32, %c0_i32_0 : i32, i32
  }
  func.func @transform_5(%arg0: i32) -> (i32, i32) {
    %c0_i32 = arith.constant 0 : i32
    %c0_i32_0 = arith.constant 0 : i32
    %c0_i32_1 = arith.constant 0 : i32
    return %c0_i32, %c0_i32_0 : i32, i32
  }
  func.func @transform_6(%arg0: i32) -> (i32, i32) {
    %c0_i32 = arith.constant 0 : i32
    %c0_i32_0 = arith.constant 0 : i32
    %c0_i32_1 = arith.constant 0 : i32
    return %c0_i32, %c0_i32_0 : i32, i32
  }
  func.func @transform_7(%arg0: i32) -> (i32, i32) {
    %c0_i32 = arith.constant 0 : i32
    %c0_i32_0 = arith.constant 0 : i32
    return %arg0, %c0_i32 : i32, i32
  }
}

</mosaic_0001>

<bundles_post_ra>
// kernel: tpu_custom_call.1
= control target key start
LH: loop header
LB: loop body
LE: loop exit
PB: predicated region body
PF: predicated region fallthrough
CT: control target
= control target key end

     0   :  { %s527_s0 = inlined_call_operand.hbm [shape: f32[8,12], index: 0, kind: input, shape index: {}]   ;;  %s528_s1 = inlined_call_operand.hbm [shape: f32[12,50], index: 1, kind: input, shape index: {}]   ;;  %s529_s2 = inlined_call_operand.vmem [shape: f32[1,50], index: 2, kind: input, shape index: {}]   ;;  %s530_s3 = inlined_call_operand.hbm [shape: f32[50,50], index: 3, kind: input, shape index: {}]   ;;  %s531_s4 = inlined_call_operand.vmem [shape: f32[1,50], index: 4, kind: input, shape index: {}]   ;;  %s532_s5 = inlined_call_operand.vmem [shape: f32[1,50], index: 5, kind: input, shape index: {}]   ;;  %s533_s6 = inlined_call_operand.<no memory space> [shape: f32[1,1], index: 6, kind: input, shape index: {}]   ;;  %s534_s7 = inlined_call_operand.vmem [shape: f32[8,1], index: 7, kind: output, shape index: {}]  }
   0x1   :  { %v12_v0 = vstv %s533_s6 }
   0x2   :  { %13 = vst [vmem:[#allocation2] sm:$0x1] %v12_v0 }
   0x3   :  { %14 = vsyncpa [#allocation4], 0 }
   0x4   :  { %15 = vsyncpa [#allocation6], 0  ;;  %s421_s26 = smov [#allocation5]   ;;  %s351_s30 = scalar_lea.hbm %s528_s1, 256 }
   0x5   :  { %s31_s27 = sshll.u32 %s421_s26, 4  ;;  %p352_p0 = scmp.ne.s32.totalorder %s528_s1, %s351_s30  ;;  %s32_s27 = int_to_ptr.vmem [resolvable:$true] %s31_s27 }
   0x6   :  { %p355_p1 = scmp.lt.u32.totalorder %s351_s30, %s528_s1 }
   0x8   :  { %p357_p2 = pnand %p355_p1, %p352_p0 }
   0xa   :  { %360 = shalt.err (!%p357_p2)
}
   0xb   :  { %s361_s6 = scalar_lea.vmem %s32_s27, 256  ;;  %p366_p4 = scmp.lt.s32.totalorder %s32_s27, %s32_s27 }
   0xc   :  { %p362_p3 = scmp.ne.s32.totalorder %s32_s27, %s361_s6  ;;  %p367_p5 = scmp.lt.s32.totalorder %s361_s6, %s361_s6 }
   0xe   :  { %p368_p6 = por %p367_p5, %p366_p4 }
  0x10   :  { %p369_p7 = pnand %p368_p6, %p362_p3 }
  0x12   :  { %372 = shalt.err (!%p369_p7)
}
  0x13   :  { %s422_s12 = smov 128   ;;  %s423_s13 = smov 8  }
  0x14   :  { %37 = dma.hbm_to_vmem [thread:$0]  %s528_s1, 256, %s32_s27, [#allocation6], %s422_s12, %s422_s12, %s423_s13  }
  0x15   :  { %s424_s16 = smov [#allocation3]   ;;  %s425_s18 = smov [#allocation7]  }
  0x16   :  { %s22_s17 = sshll.u32 %s424_s16, 4  ;;  %s45_s19 = sshll.u32 %s425_s18, 4  ;;  %s23_s17 = int_to_ptr.vmem [resolvable:$true] %s22_s17  ;;  %s46_s19 = int_to_ptr.vmem [resolvable:$true] %s45_s19 }
  0x17   :  { %s373_s22 = scalar_lea.hbm %s527_s0, 128 }
  0x18   :  { %p374_p8 = scmp.ne.s32.totalorder %s527_s0, %s373_s22  ;;  %p377_p9 = scmp.lt.u32.totalorder %s373_s22, %s527_s0 }
  0x1a   :  { %p379_p10 = pnand %p377_p9, %p374_p8 }
  0x1c   :  { %382 = shalt.err (!%p379_p10)
}
  0x1d   :  { %s383_s1 = scalar_lea.vmem %s23_s17, 128  ;;  %p388_p12 = scmp.lt.s32.totalorder %s23_s17, %s23_s17 }
  0x1e   :  { %p384_p11 = scmp.ne.s32.totalorder %s23_s17, %s383_s1  ;;  %p389_p13 = scmp.lt.s32.totalorder %s383_s1, %s383_s1 }
  0x20   :  { %p390_p0 = por %p389_p13, %p388_p12 }
  0x22   :  { %p391_p1 = pnand %p390_p0, %p384_p11 }
  0x24   :  { %394 = shalt.err (!%p391_p1)
}
  0x25   :  { %25 = dma.hbm_to_vmem [thread:$0]  %s527_s0, 128, %s23_s17, [#allocation4]  }
  0x26   :  { %s395_s8 = scalar_lea.hbm %s530_s3, 896 }
  0x27   :  { %p396_p2 = scmp.ne.s32.totalorder %s530_s3, %s395_s8  ;;  %p399_p3 = scmp.lt.u32.totalorder %s395_s8, %s530_s3 }
  0x29   :  { %p401_p4 = pnand %p399_p3, %p396_p2 }
  0x2b   :  { %404 = shalt.err (!%p401_p4)
}
  0x2c   :  { %s405_s14 = scalar_lea.vmem %s46_s19, 896  ;;  %p410_p6 = scmp.lt.s32.totalorder %s46_s19, %s46_s19 }
  0x2d   :  { %p406_p5 = scmp.ne.s32.totalorder %s46_s19, %s405_s14  ;;  %p411_p7 = scmp.lt.s32.totalorder %s405_s14, %s405_s14 }
  0x2f   :  { %p412_p8 = por %p411_p7, %p410_p6 }
  0x31   :  { %p413_p9 = pnand %p412_p8, %p406_p5 }
  0x33   :  { %416 = shalt.err (!%p413_p9)
}
  0x34   :  { %51 = dma.hbm_to_vmem [thread:$0]  %s530_s3, 896, %s46_s19, [#allocation6], %s422_s12, %s422_s12, %s423_s13  }
  0x35   :  { %417 = dma.done.wait [#allocation4], 128  }
  0x36   :  { %418 = vsyncadd [#allocation4], 4294967168 }
  0x37   :  { %419 = dma.done.wait [#allocation6], 1152  }
  0x38   :  { %420 = vsyncadd [#allocation6], 4294966144  ;;  %v426_v1 = vmov 0.0|0.0   ;;  %vm427_vm0 = vmmov 0   ;;  %v428_v2 = vmov 0.0   ;;  %vm81_vm1 = vcmask 1043456  }
  0x39   :  { %323 = vmatprep.subr.bf16.mxu0 %v426_v1  ;;  %327 = vmatprep.subr.bf16.mxu1 %v426_v1  ;;  %v68_v3 = vld [vmem:[#allocation5] sm:$0xff]  ;;  %v69_v4 = vld [vmem:[#allocation5 + $0x8] sm:$0xf]  ;;  %vm429_vm2 = vmmov 1   ;;  %v67_v6 = vld [vmem:[#allocation3] sm:$0xff]  ;;  %vm77_vm4 = vcmask 97280  }
  0x3a   :  { %303 = vmatprep.mubr.msk.f32.mxu0 %vm427_vm0, %v428_v2  ;;  %320 = vmatprep.mubr.msk.f32.mxu1 %vm427_vm0, %v428_v2  ;;  %vm325_vm3 = vmpackc.low %vm81_vm1, %vm429_vm2  ;;  %v324_v5 = vpack.c.bf16 %v69_v4, %v68_v3  ;;  %v156_v7 = vld [vmem:[#allocation7] sm:$0xff]  ;;  %v157_v8 = vld [vmem:[#allocation7 + $0x8] sm:$0xff]  ;;  %vm174_vm5 = vcmask 1041408   ;;  %vm170_vm6 = vcmask 408576   ;;  %vm272_vm7 = vcmask 7168  }
  0x3b   :  { %v328_v9 = vpack.c.bf16 %v157_v8, %v156_v7  ;;  %v158_v10 = vld [vmem:[#allocation7 + $0x10] sm:$0xff]  ;;  %v159_v11 = vld [vmem:[#allocation7 + $0x18] sm:$0xff]  ;;  %v160_v13 = vld [vmem:[#allocation7 + $0x20] sm:$0xff] }
  0x3c   :  { %326 = vmatpush3.bf16.msk.msra.mxu0 %vm325_vm3, %v324_v5  ;;  %v331_v12 = vpack.c.bf16 %v159_v11, %v158_v10  ;;  %v161_v14 = vld [vmem:[#allocation7 + $0x28] sm:$0xff]  ;;  %v162_v16 = vld [vmem:[#allocation7 + $0x30] sm:$0x3]  ;;  %v280_v17 = vld [vmem:[%s529_s2] ss:$0 sm:$0xff] }
  0x3d   :  { %329 = vmatpush3.bf16.msra.mxu1 %v328_v9  ;;  %v334_v15 = vpack.c.bf16 %v161_v14, %v160_v13  ;;  %v283_v22 = vld [vmem:[%s531_s4] ss:$0 sm:$0xff] }
  0x3e   :  { %330 = vmatprep.subr.bf16.mxu1 %v426_v1  ;;  %v286_v26 = vld [vmem:[%s532_s5] ss:$0 sm:$0xff] }
  0x3f   :  { %304 = vmatmul.mubr.msk.f32.vlgmr.msra.gmra.mrb[0].mxu0 %vm77_vm4, %v67_v6  ;;  %v287_v30 = vld [vmem:[#allocation2] ss:$0 sm:$0xff] }
  0x41   :  { %332 = vmatpush3.bf16.msra.mxu1 %v331_v12 }
  0x42   :  { %333 = vmatprep.subr.bf16.mxu1 %v426_v1 }
  0x45   :  { %335 = vmatpush3.bf16.msra.mxu1 %v334_v15 }
  0x46   :  { %318 = vmatprep.subr.mxu1 %v428_v2 }
  0x49   :  { %319 = vmatpush3.msk.msra.mxu1 %vm174_vm5, %v162_v16 }
 0x112   :  { %v151_v18 = vpop.f32.mrb[0].mxu0 }
 0x113   :  { %v152_v19 = vadd.f32 %v280_v17, %v151_v18  ;;  %v305_v20 = vpop.f32.mrb[1].mxu0 }
 0x115   :  { %345 = vtanh.f32 %v152_v19 }
 0x11f   :  { %v346_v21 = vpop.eup %345 }
 0x120   :  { %321 = vmatmul.mubr.msk.f32.vlgmr.msra.gmra.mrb[0].mxu1 %vm170_vm6, %v346_v21 }
 0x1f3   :  { %v244_v23 = vpop.f32.mrb[0].mxu1 }
 0x1f4   :  { %v245_v24 = vadd.f32 %v283_v22, %v244_v23  ;;  %v322_v25 = vpop.f32.mrb[1].mxu1 }
 0x1f6   :  { %347 = vtanh.f32 %v245_v24 }
 0x200   :  { %v348_v27 = vpop.eup %347 }
 0x201   :  { %v256_v28 = vmul.f32 %v348_v27, %v286_v26 }
 0x203   :  { %v257_v29 = vsel %vm170_vm6, %v256_v28, 0.0 }
 0x204   :  { %258 = vadd.xlane.f32.xlu0 %v257_v29 }
 0x291   :  { %v259_v31 = vpop.xlane.xlu0 %258 }
 0x292   :  { %v267_v32 = vadd.f32 %v287_v30, %v259_v31 }
 0x294   :  { %v268_v33 = vmul.f32 0.5, %v267_v32 }
 0x296   :  { %349 = vtanh.f32 %v268_v33 }
 0x2a0   :  { %v350_v34 = vpop.eup %349 }
 0x2a1   :  { %v270_v35 = vadd.f32 1.0, %v350_v34 }
 0x2a3   :  { %v271_v36 = vmul.f32 0.5, %v270_v35 }
 0x2a5   :  { %273 = vst.msk [vmem:[%s534_s7] sm:$0xff] %vm272_vm7, %v271_v36 }
 0x2a6   :  { %278 = vsyncpa [#allocation4], 1 }
 0x2a7   :  { %279 = vsyncpa [#allocation6], 1 }

</bundles_post_ra>
